<compile_context>
chip_gen: v6e
topology: v6e:2x2x1
jax: 0.10.0
libtpu: 0.0.40
codegen_flags: <defaults>
</compile_context>

<pallas_src>
import jax
import jax.numpy as jnp
from jax.experimental import pallas as pl
from jax.experimental.pallas import tpu as pltpu

IN_FEATURES = 4096
LANE = 128
SUBLANE = 8
VMEM_BUDGET = 48 << 20  # fits under v7x 64 MiB physical; > v5e 16 MiB scoped default


def _round_up(x, m):
    return (x + m - 1) // m * m


def _plan(batch, n_units):
    """Pick hidden padding, batch tile and an explicit VMEM limit."""
    n_pad = _round_up(n_units, LANE)
    k = IN_FEATURES
    # Resident, single-buffered operands: W1 (bf16) + b1/w2 rows + b2.
    fixed = k * n_pad * 2 + 2 * (n_pad * 4) + 4
    # Per batch-row VMEM: double-buffered f32 x tile + in-kernel bf16 x copy
    # + f32 h intermediate + (double-buffered) f32 output row.
    per_row = 2 * (k * 4) + k * 2 + n_pad * 4 + 2 * 4
    tb_cap = max(SUBLANE, ((VMEM_BUDGET - fixed) // per_row) // SUBLANE * SUBLANE)
    tb = min(512, tb_cap, _round_up(batch, SUBLANE))
    b_pad = _round_up(batch, tb)
    vmem_limit = min(max(fixed + tb * per_row + (4 << 20), 32 << 20), 60 << 20)
    return n_pad, tb, b_pad, int(vmem_limit)


def _two_layer_kernel(x_ref, w1_ref, b1_ref, w2_ref, b2_ref, out_ref):
    # x arrives f32 from HBM; cast to bf16 on the VPU just before the MXU dot.
    x_bf = x_ref[...].astype(jnp.bfloat16)
    # fc1: (tb, K) bf16 @ (K, n_pad) bf16 -> f32 accumulation on the MXU.
    h = jnp.dot(x_bf, w1_ref[...], preferred_element_type=jnp.float32)
    h = jnp.maximum(h + b1_ref[...], 0.0)  # bias + ReLU (f32, VPU)
    # fc2 with out_features = 1: VPU multiply + lane reduction (no N=1 matmul).
    score = jnp.sum(h * w2_ref[...], axis=-1, keepdims=True) + b2_ref[...]  # (tb, 1)
    # Sigmoid: exp on the EUP; exact divide is noise at B floats total.
    out_ref[...] = (1.0 / (1.0 + jnp.exp(-score))).astype(out_ref.dtype)


@jax.jit
def two_layered_linear(x, w1, b1, w2, b2):
    """x: (B, 4096) f32. w1: (4096, n_units), b1: (n_units,), w2: (n_units,), b2: (1,).

    Returns prob: (B,) f32 — matches torch sigmoid(fc2(relu(fc1(x))).squeeze()).
    """
    B, K = x.shape
    assert K == IN_FEATURES
    n_units = w1.shape[1]
    n_pad, tb, b_pad, vmem_limit = _plan(B, n_units)

    # ---- wrapper-side prep (no bulk copy of x unless the batch is ragged) ----
    x_in = x.astype(jnp.float32)
    if b_pad != B:
        x_in = jnp.pad(x_in, ((0, b_pad - B), (0, 0)))  # only the ragged tail

    w1_in = w1.astype(jnp.bfloat16)
    if n_pad != n_units:
        w1_in = jnp.pad(w1_in, ((0, 0), (0, n_pad - n_units)))
    b1_in = jnp.pad(b1.reshape(1, -1).astype(jnp.float32),
                    ((0, 0), (0, n_pad - n_units)))
    w2_in = jnp.pad(w2.reshape(1, -1).astype(jnp.float32),
                    ((0, 0), (0, n_pad - n_units)))  # padded units get weight 0
    b2_in = jnp.asarray(b2, jnp.float32).reshape(1, 1)

    cost = pl.CostEstimate(
        flops=2 * b_pad * K * n_pad + 4 * b_pad * n_pad,
        transcendentals=b_pad,
        bytes_accessed=b_pad * K * 4            # x (f32, streamed once)
        + K * n_pad * 2                         # W1 (bf16, resident)
        + (2 * n_pad + 1 + b_pad) * 4,          # b1, w2, b2, output
    )

    out = pl.pallas_call(
        _two_layer_kernel,
        out_shape=jax.ShapeDtypeStruct((b_pad, 1), jnp.float32),
        grid_spec=pltpu.PrefetchScalarGridSpec(
            num_scalar_prefetch=0,
            grid=(b_pad // tb,),                                   # batch tiles only
            in_specs=[
                # x: f32 batch tile, streamed (double-buffered by default).
                pl.BlockSpec((tb, K), lambda b: (b, 0)),
                # Constant-index residents: single-buffered (no re-DMA anyway).
                pl.BlockSpec((K, n_pad), lambda b: (0, 0),
                             pipeline_mode=pl.Buffered(1)),        # W1 (bf16)
                pl.BlockSpec((1, n_pad), lambda b: (0, 0),
                             pipeline_mode=pl.Buffered(1)),        # b1
                pl.BlockSpec((1, n_pad), lambda b: (0, 0),
                             pipeline_mode=pl.Buffered(1)),        # w2 row vector
                pl.BlockSpec((1, 1), lambda b: (0, 0),
                             pipeline_mode=pl.Buffered(1)),        # b2
            ],
            out_specs=pl.BlockSpec((tb, 1), lambda b: (b, 0)),
        ),
        compiler_params=pltpu.CompilerParams(
            dimension_semantics=("parallel",),   # independent batch tiles
            vmem_limit_bytes=vmem_limit,         # explicit: above v5e's 16 MiB default,
                                                 # below v7x's 64 MiB physical
        ),
        cost_estimate=cost,
    )(x_in, w1_in, b1_in, w2_in, b2_in)
    return out[:B, 0]                            # squeeze -> (B,)


if __name__ == "__main__":
    key = jax.random.PRNGKey(0)
    k_x, k1, k2, k3, k4 = jax.random.split(key, 5)

    B = 8          # small batch
    n_units = 32   # small hidden width

    # nn.Linear-style init: U(-1/sqrt(fan_in), +1/sqrt(fan_in)).
    bound1 = 1.0 / jnp.sqrt(IN_FEATURES)
    bound2 = 1.0 / jnp.sqrt(n_units)
    x = jax.random.normal(k_x, (B, IN_FEATURES), jnp.float32)
    w1 = jax.random.uniform(k1, (IN_FEATURES, n_units), jnp.float32, -bound1, bound1)
    b1 = jax.random.uniform(k2, (n_units,), jnp.float32, -bound1, bound1)
    w2 = jax.random.uniform(k3, (n_units,), jnp.float32, -bound2, bound2)
    b2 = jax.random.uniform(k4, (1,), jnp.float32, -bound2, bound2)

    prob = jax.block_until_ready(two_layered_linear(x, w1, b1, w2, b2))

    # Pure-JAX reference with the same bf16-rounded fc1 operands (the kernel
    # accumulates in f32 on the MXU).
    xb = x.astype(jnp.bfloat16).astype(jnp.float32)
    w1b = w1.astype(jnp.bfloat16).astype(jnp.float32)
    h_ref = jnp.maximum(xb @ w1b + b1[None, :], 0.0)
    prob_ref = jax.nn.sigmoid(h_ref @ w2[:, None] + b2[None, :])[:, 0]

    assert prob.shape == (B,)
    assert jnp.allclose(prob, prob_ref, atol=2e-3, rtol=2e-3), "mismatch vs reference"

    print("KERNEL_OK")
</pallas_src>

<mosaic_0001>
module attributes {stable_mosaic.version = 11 : i64} {
  func.func @_two_layer_kernel(%arg0: i32, %arg1: memref<8x4096xf32, #tpu.memory_space<vmem>>, %arg2: memref<4096x128xbf16, #tpu.memory_space<vmem>>, %arg3: memref<1x128xf32, #tpu.memory_space<vmem>>, %arg4: memref<1x128xf32, #tpu.memory_space<vmem>>, %arg5: memref<1x1xf32, #tpu.memory_space<vmem>>, %arg6: memref<8x1xf32, #tpu.memory_space<vmem>>) attributes {dimension_semantics = [#tpu.dimension_semantics<parallel>], iteration_bounds = array<i64: 1>, scalar_prefetch = 0 : i64, scratch_operands = 0 : i64, tpu.core_type = #tpu.core_type<tc>, window_params = [{transform_indices = @transform_0, window_bounds = array<i64: 8, 4096>}, {pipeline_mode = #tpu.pipeline_mode<synchronous>, transform_indices = @transform_1, window_bounds = array<i64: 4096, 128>}, {pipeline_mode = #tpu.pipeline_mode<synchronous>, transform_indices = @transform_2, window_bounds = array<i64: 1, 128>}, {pipeline_mode = #tpu.pipeline_mode<synchronous>, transform_indices = @transform_3, window_bounds = array<i64: 1, 128>}, {pipeline_mode = #tpu.pipeline_mode<synchronous>, transform_indices = @transform_4, window_bounds = array<i64: 1, 1>}, {transform_indices = @transform_5, window_bounds = array<i64: 8, 1>}]} {
    %c0 = arith.constant 0 : index
    %c0_0 = arith.constant 0 : index
    %0 = vector.load %arg1[%c0, %c0_0] : memref<8x4096xf32, #tpu.memory_space<vmem>>, vector<8x4096xf32>
    %1 = arith.truncf %0 : vector<8x4096xf32> to vector<8x4096xbf16>
    %c0_1 = arith.constant 0 : index
    %c0_2 = arith.constant 0 : index
    %2 = vector.load %arg2[%c0_1, %c0_2] : memref<4096x128xbf16, #tpu.memory_space<vmem>>, vector<4096x128xbf16>
    %cst = arith.constant dense<0.000000e+00> : vector<8x128xf32>
    %3 = tpu.matmul %1, %2, %cst {dimension_numbers = #tpu.dot_dimension_numbers<[1], [0], [0], [1], [0, 0, 1, 1], [], []>} : vector<8x4096xbf16>, vector<4096x128xbf16>, vector<8x128xf32> -> vector<8x128xf32>
    %c0_3 = arith.constant 0 : index
    %c0_4 = arith.constant 0 : index
    %4 = vector.load %arg3[%c0_3, %c0_4] : memref<1x128xf32, #tpu.memory_space<vmem>>, vector<1x128xf32>
    %5 = vector.broadcast %4 : vector<1x128xf32> to vector<8x128xf32>
    %6 = arith.addf %3, %5 : vector<8x128xf32>
    %cst_5 = arith.constant 0.000000e+00 : f32
    %7 = vector.broadcast %cst_5 : f32 to vector<8x128xf32>
    %8 = arith.maximumf %6, %7 : vector<8x128xf32>
    %c0_6 = arith.constant 0 : index
    %c0_7 = arith.constant 0 : index
    %9 = vector.load %arg4[%c0_6, %c0_7] : memref<1x128xf32, #tpu.memory_space<vmem>>, vector<1x128xf32>
    %10 = vector.broadcast %9 : vector<1x128xf32> to vector<8x128xf32>
    %11 = arith.mulf %8, %10 : vector<8x128xf32>
    %cst_8 = arith.constant dense<0.000000e+00> : vector<8xf32>
    %12 = vector.multi_reduction <add>, %11, %cst_8 [1] : vector<8x128xf32> to vector<8xf32>
    %13 = vector.shape_cast %12 : vector<8xf32> to vector<8x1xf32>
    %c0_9 = arith.constant 0 : index
    %c0_10 = arith.constant 0 : index
    %14 = vector.load %arg5[%c0_9, %c0_10] : memref<1x1xf32, #tpu.memory_space<vmem>>, vector<1x1xf32>
    %15 = vector.broadcast %14 : vector<1x1xf32> to vector<8x1xf32>
    %16 = arith.addf %13, %15 : vector<8x1xf32>
    %cst_11 = arith.constant 0.000000e+00 : f32
    %17 = vector.broadcast %cst_11 : f32 to vector<8x1xf32>
    %18 = arith.subf %17, %16 : vector<8x1xf32>
    %19 = math.exp %18 : vector<8x1xf32>
    %cst_12 = arith.constant 1.000000e+00 : f32
    %20 = vector.broadcast %cst_12 : f32 to vector<8x1xf32>
    %21 = arith.addf %20, %19 : vector<8x1xf32>
    %cst_13 = arith.constant 1.000000e+00 : f32
    %22 = vector.broadcast %cst_13 : f32 to vector<8x1xf32>
    %23 = arith.divf %22, %21 : vector<8x1xf32>
    %c0_14 = arith.constant 0 : index
    %c0_15 = arith.constant 0 : index
    %24 = vector.load %arg6[%c0_14, %c0_15] : memref<8x1xf32, #tpu.memory_space<vmem>>, vector<8x1xf32>
    tpu.vector_store %arg6[%c0_14, %c0_15], %23 {strides = array<i32>} : memref<8x1xf32, #tpu.memory_space<vmem>>, vector<8x1xf32>,
    return
  }
  func.func @transform_0(%arg0: i32) -> (i32, i32) {
    %c0_i32 = arith.constant 0 : i32
    %c0_i32_0 = arith.constant 0 : i32
    return %arg0, %c0_i32 : i32, i32
  }
  func.func @transform_1(%arg0: i32) -> (i32, i32) {
    %c0_i32 = arith.constant 0 : i32
    %c0_i32_0 = arith.constant 0 : i32
    %c0_i32_1 = arith.constant 0 : i32
    return %c0_i32, %c0_i32_0 : i32, i32
  }
  func.func @transform_2(%arg0: i32) -> (i32, i32) {
    %c0_i32 = arith.constant 0 : i32
    %c0_i32_0 = arith.constant 0 : i32
    %c0_i32_1 = arith.constant 0 : i32
    return %c0_i32, %c0_i32_0 : i32, i32
  }
  func.func @transform_3(%arg0: i32) -> (i32, i32) {
    %c0_i32 = arith.constant 0 : i32
    %c0_i32_0 = arith.constant 0 : i32
    %c0_i32_1 = arith.constant 0 : i32
    return %c0_i32, %c0_i32_0 : i32, i32
  }
  func.func @transform_4(%arg0: i32) -> (i32, i32) {
    %c0_i32 = arith.constant 0 : i32
    %c0_i32_0 = arith.constant 0 : i32
    %c0_i32_1 = arith.constant 0 : i32
    return %c0_i32, %c0_i32_0 : i32, i32
  }
  func.func @transform_5(%arg0: i32) -> (i32, i32) {
    %c0_i32 = arith.constant 0 : i32
    %c0_i32_0 = arith.constant 0 : i32
    return %arg0, %c0_i32 : i32, i32
  }
}

</mosaic_0001>

<bundles_post_ra>
// kernel: two_layered_linear.1
= control target key start
LH: loop header
LB: loop body
LE: loop exit
PB: predicated region body
PF: predicated region fallthrough
CT: control target
= control target key end

     0   :  { %vm2807_vm0 = vcmask 7168   ;;  %s4593_s1 = inlined_call_operand.vmem [shape: bf16[4096,128], index: 1, kind: input, shape index: {}]   ;;  %s4594_s0 = inlined_call_operand.vmem [shape: f32[8,4096], index: 0, kind: input, shape index: {}]   ;;  %s4595_s2 = inlined_call_operand.vmem [shape: f32[1,128], index: 2, kind: input, shape index: {}]   ;;  %s4596_s4 = inlined_call_operand.<no memory space> [shape: f32[1,1], index: 4, kind: input, shape index: {}]   ;;  %s4597_s3 = inlined_call_operand.vmem [shape: f32[1,128], index: 3, kind: input, shape index: {}]   ;;  %s4598_s5 = inlined_call_operand.vmem [shape: f32[8,1], index: 5, kind: output, shape index: {}]  }
   0x1   :  { %v3424_v0 = vld [vmem:[%s4593_s1 + $0x78] sm:$0xff]   ;;  %v3428_v4 = vld [vmem:[%s4593_s1 + $0x70] sm:$0xff]   ;;  %v3432_v8 = vld [vmem:[%s4593_s1 + $0x68] sm:$0xff]  }
   0x2   :  { %v3425_v1 = vld [vmem:[%s4593_s1 + $0xf8] sm:$0xff]   ;;  %3072 = vmatprep.subr.bf16.mxu0 %v3424_v0  ;;  %v3429_v5 = vld [vmem:[%s4593_s1 + $0xf0] sm:$0xff]   ;;  %v3433_v9 = vld [vmem:[%s4593_s1 + $0xe8] sm:$0xff]  }
   0x3   :  { %v3426_v2 = vld [vmem:[%s4593_s1 + $0x38] sm:$0xff]   ;;  %3094 = vmatprep.subr.bf16.mxu1 %v3425_v1  ;;  %v3430_v6 = vld [vmem:[%s4593_s1 + $0x30] sm:$0xff]   ;;  %v3434_v10 = vld [vmem:[%s4593_s1 + $0x28] sm:$0xff]  }
   0x4   :  { %v3427_v3 = vld [vmem:[%s4593_s1 + $0xb8] sm:$0xff]   ;;  %3073 = vmatpush3.bf16.msra.mxu0 %v3426_v2  ;;  %v3431_v7 = vld [vmem:[%s4593_s1 + $0xb0] sm:$0xff]   ;;  %v3435_v11 = vld [vmem:[%s4593_s1 + $0xa8] sm:$0xff]  }
   0x5   :  { %3095 = vmatpush3.bf16.msra.mxu1 %v3427_v3  ;;  %3074 = vmatprep.subr.bf16.mxu0 %v3428_v4  ;;  %v3436_v12 = vld [vmem:[%s4593_s1 + $0x60] sm:$0xff]   ;;  %v3440_v16 = vld [vmem:[%s4593_s1 + $0x58] sm:$0xff]   ;;  %v3444_v20 = vld [vmem:[%s4593_s1 + $0x50] sm:$0xff]  }
   0x6   :  { %3096 = vmatprep.subr.bf16.mxu1 %v3429_v5  ;;  %v3437_v13 = vld [vmem:[%s4593_s1 + $0xe0] sm:$0xff]   ;;  %v3441_v17 = vld [vmem:[%s4593_s1 + $0xd8] sm:$0xff]   ;;  %v3445_v21 = vld [vmem:[%s4593_s1 + $0xd0] sm:$0xff]  }
   0x7   :  { %v3438_v14 = vld [vmem:[%s4593_s1 + $0x20] sm:$0xff]   ;;  %v3442_v18 = vld [vmem:[%s4593_s1 + $0x18] sm:$0xff]   ;;  %v3446_v22 = vld [vmem:[%s4593_s1 + $0x10] sm:$0xff]  }
   0x8   :  { %3075 = vmatpush3.bf16.msra.mxu0 %v3430_v6  ;;  %v3439_v15 = vld [vmem:[%s4593_s1 + $0xa0] sm:$0xff]   ;;  %v3443_v19 = vld [vmem:[%s4593_s1 + $0x98] sm:$0xff]   ;;  %v3447_v23 = vld [vmem:[%s4593_s1 + $0x90] sm:$0xff]  }
   0x9   :  { %3097 = vmatpush3.bf16.msra.mxu1 %v3431_v7  ;;  %3076 = vmatprep.subr.bf16.mxu0 %v3432_v8  ;;  %v3448_v24 = vld [vmem:[%s4593_s1 + $0x48] sm:$0xff]   ;;  %v3452_v28 = vld [vmem:[%s4593_s1 + $0x40] sm:$0xff]   ;;  %v26_v33 = vld [vmem:[%s4594_s0 + $0x18] sm:$0xff] }
   0xa   :  { %3098 = vmatprep.subr.bf16.mxu1 %v3433_v9  ;;  %v3449_v25 = vld [vmem:[%s4593_s1 + $0xc8] sm:$0xff]   ;;  %v3453_v29 = vld [vmem:[%s4593_s1 + $0xc0] sm:$0xff]   ;;  %v58_v36 = vpack.c.bf16 %v26_v33, %v26_v33  ;;  %v25_v38 = vld [vmem:[%s4594_s0 + $0x10] sm:$0xff] }
   0xb   :  { %v3450_v26 = vld [vmem:[%s4593_s1 + $0x8] sm:$0xff]   ;;  %v3454_v30 = vld [vmem:[%s4593_s1] sm:$0xff]   ;;  %v57_v39 = vpack.c.bf16 %v25_v38, %v25_v38  ;;  %v3456_v40 = vld [vmem:[%s4593_s1 + $0x178] sm:$0xff]  }
   0xc   :  { %3077 = vmatpush3.bf16.msra.mxu0 %v3434_v10  ;;  %v3451_v27 = vld [vmem:[%s4593_s1 + $0x88] sm:$0xff]   ;;  %v3455_v31 = vld [vmem:[%s4593_s1 + $0x80] sm:$0xff]   ;;  %2214 = vmatprep.mubr.bf16.mxu1 %v58_v36  ;;  %v3457_v41 = vld [vmem:[%s4593_s1 + $0x1f8] sm:$0xff]  }
   0xd   :  { %3099 = vmatpush3.bf16.msra.mxu1 %v3435_v11  ;;  %3078 = vmatprep.subr.bf16.mxu0 %v3436_v12  ;;  %v24_v32 = vld [vmem:[%s4594_s0 + $0x8] sm:$0xff]  ;;  %v23_v34 = vld [vmem:[%s4594_s0] sm:$0xff]  ;;  %v3458_v42 = vld [vmem:[%s4593_s1 + $0x138] sm:$0xff]  }
   0xe   :  { %3100 = vmatprep.subr.bf16.mxu1 %v3437_v13  ;;  %v56_v35 = vpack.c.bf16 %v24_v32, %v24_v32  ;;  %v55_v37 = vpack.c.bf16 %v23_v34, %v23_v34  ;;  %v3459_v43 = vld [vmem:[%s4593_s1 + $0x1b8] sm:$0xff]   ;;  %v3460_v44 = vld [vmem:[%s4593_s1 + $0x170] sm:$0xff]   ;;  %v3464_v48 = vld [vmem:[%s4593_s1 + $0x168] sm:$0xff]  }
   0xf   :  { %v3461_v45 = vld [vmem:[%s4593_s1 + $0x1f0] sm:$0xff]   ;;  %v3465_v49 = vld [vmem:[%s4593_s1 + $0x1e8] sm:$0xff]   ;;  %v3468_v52 = vld [vmem:[%s4593_s1 + $0x160] sm:$0xff]  }
  0x10   :  { %3079 = vmatpush3.bf16.msra.mxu0 %v3438_v14  ;;  %2174 = vmatprep.mubr.bf16.mxu0 %v56_v35  ;;  %v3462_v46 = vld [vmem:[%s4593_s1 + $0x130] sm:$0xff]   ;;  %v3466_v50 = vld [vmem:[%s4593_s1 + $0x128] sm:$0xff]   ;;  %v3469_v53 = vld [vmem:[%s4593_s1 + $0x1e0] sm:$0xff]  }
  0x11   :  { %3101 = vmatpush3.bf16.msra.mxu1 %v3439_v15  ;;  %3080 = vmatprep.subr.bf16.mxu0 %v3440_v16  ;;  %v3463_v47 = vld [vmem:[%s4593_s1 + $0x1b0] sm:$0xff]   ;;  %v3467_v51 = vld [vmem:[%s4593_s1 + $0x1a8] sm:$0xff]   ;;  %v3470_v54 = vld [vmem:[%s4593_s1 + $0x120] sm:$0xff]  }
  0x12   :  { %3102 = vmatprep.subr.bf16.mxu1 %v3441_v17  ;;  %v3471_v55 = vld [vmem:[%s4593_s1 + $0x1a0] sm:$0xff]   ;;  %v3472_v56 = vld [vmem:[%s4593_s1 + $0x158] sm:$0xff]   ;;  %v3476_v60 = vld [vmem:[%s4593_s1 + $0x150] sm:$0xff]  }
  0x13   :  { %v3473_v57 = vld [vmem:[%s4593_s1 + $0x1d8] sm:$0xff]   ;;  %v3477_v61 = vld [vmem:[%s4593_s1 + $0x1d0] sm:$0xff]   ;;  %v3480_v0 = vld [vmem:[%s4593_s1 + $0x148] sm:$0xff]  }
  0x14   :  { %3081 = vmatpush3.bf16.msra.mxu0 %v3442_v18  ;;  %v3474_v58 = vld [vmem:[%s4593_s1 + $0x118] sm:$0xff]   ;;  %v3478_v62 = vld [vmem:[%s4593_s1 + $0x110] sm:$0xff]   ;;  %v3481_v1 = vld [vmem:[%s4593_s1 + $0x1c8] sm:$0xff]  }
  0x15   :  { %3103 = vmatpush3.bf16.msra.mxu1 %v3443_v19  ;;  %3082 = vmatprep.subr.bf16.mxu0 %v3444_v20  ;;  %v3475_v59 = vld [vmem:[%s4593_s1 + $0x198] sm:$0xff]   ;;  %v3479_v63 = vld [vmem:[%s4593_s1 + $0x190] sm:$0xff]   ;;  %v3482_v2 = vld [vmem:[%s4593_s1 + $0x108] sm:$0xff]  }
  0x16   :  { %3104 = vmatprep.subr.bf16.mxu1 %v3445_v21  ;;  %v3483_v3 = vld [vmem:[%s4593_s1 + $0x188] sm:$0xff]   ;;  %v3484_v4 = vld [vmem:[%s4593_s1 + $0x140] sm:$0xff]   ;;  %v30_v9 = vld [vmem:[%s4594_s0 + $0x38] sm:$0xff] }
  0x17   :  { %v3485_v5 = vld [vmem:[%s4593_s1 + $0x1c0] sm:$0xff]   ;;  %v28_v8 = vld [vmem:[%s4594_s0 + $0x28] sm:$0xff]  ;;  %v62_v11 = vpack.c.bf16 %v30_v9, %v30_v9  ;;  %v29_v13 = vld [vmem:[%s4594_s0 + $0x30] sm:$0xff] }
  0x18   :  { %3083 = vmatpush3.bf16.msra.mxu0 %v3446_v22  ;;  %v3486_v6 = vld [vmem:[%s4593_s1 + $0x100] sm:$0xff]   ;;  %v60_v10 = vpack.c.bf16 %v28_v8, %v28_v8  ;;  %v61_v15 = vpack.c.bf16 %v29_v13, %v29_v13  ;;  %v3488_v16 = vld [vmem:[%s4593_s1 + $0x278] sm:$0xff]   ;;  %v3492_v20 = vld [vmem:[%s4593_s1 + $0x270] sm:$0xff]  }
  0x19   :  { %3105 = vmatpush3.bf16.msra.mxu1 %v3447_v23  ;;  %3084 = vmatprep.subr.bf16.mxu0 %v3448_v24  ;;  %v3487_v7 = vld [vmem:[%s4593_s1 + $0x180] sm:$0xff]   ;;  %v3489_v17 = vld [vmem:[%s4593_s1 + $0x2f8] sm:$0xff]   ;;  %v3493_v21 = vld [vmem:[%s4593_s1 + $0x2f0] sm:$0xff]  }
  0x1a   :  { %3106 = vmatprep.subr.bf16.mxu1 %v3449_v25  ;;  %v27_v12 = vld [vmem:[%s4594_s0 + $0x20] sm:$0xff]  ;;  %v3490_v18 = vld [vmem:[%s4593_s1 + $0x238] sm:$0xff]   ;;  %v3494_v22 = vld [vmem:[%s4593_s1 + $0x230] sm:$0xff]  }
  0x1b   :  { %v59_v14 = vpack.c.bf16 %v27_v12, %v27_v12  ;;  %v3491_v19 = vld [vmem:[%s4593_s1 + $0x2b8] sm:$0xff]   ;;  %v3495_v23 = vld [vmem:[%s4593_s1 + $0x2b0] sm:$0xff]   ;;  %v3496_v24 = vld [vmem:[%s4593_s1 + $0x268] sm:$0xff]  }
  0x1c   :  { %3085 = vmatpush3.bf16.msra.mxu0 %v3450_v26  ;;  %v3497_v25 = vld [vmem:[%s4593_s1 + $0x2e8] sm:$0xff]   ;;  %v3504_v32 = vld [vmem:[%s4593_s1 + $0x258] sm:$0xff]   ;;  %v3508_v36 = vld [vmem:[%s4593_s1 + $0x250] sm:$0xff]  }
  0x1d   :  { %3107 = vmatpush3.bf16.msra.mxu1 %v3451_v27  ;;  %3086 = vmatprep.subr.bf16.mxu0 %v3452_v28  ;;  %v3498_v26 = vld [vmem:[%s4593_s1 + $0x228] sm:$0xff]   ;;  %v3500_v28 = vld [vmem:[%s4593_s1 + $0x260] sm:$0xff]   ;;  %v3505_v33 = vld [vmem:[%s4593_s1 + $0x2d8] sm:$0xff]  }
  0x1e   :  { %3108 = vmatprep.subr.bf16.mxu1 %v3453_v29  ;;  %v3499_v27 = vld [vmem:[%s4593_s1 + $0x2a8] sm:$0xff]   ;;  %v3501_v29 = vld [vmem:[%s4593_s1 + $0x2e0] sm:$0xff]   ;;  %v3506_v34 = vld [vmem:[%s4593_s1 + $0x218] sm:$0xff]  }
  0x1f   :  { %v3507_v35 = vld [vmem:[%s4593_s1 + $0x298] sm:$0xff]   ;;  %v3510_v38 = vld [vmem:[%s4593_s1 + $0x210] sm:$0xff]  }
  0x20   :  { %3087 = vmatpush3.bf16.msra.mxu0 %v3454_v30  ;;  %v3502_v30 = vld [vmem:[%s4593_s1 + $0x220] sm:$0xff]   ;;  %v3536_v8 = vld [vmem:[%s4593_s1 + $0x358] sm:$0xff]   ;;  %v3540_v12 = vld [vmem:[%s4593_s1 + $0x350] sm:$0xff]  }
  0x21   :  { %3109 = vmatpush3.bf16.msra.mxu1 %v3455_v31  ;;  %3116 = vmatprep.subr.bf16.mxu0 %v3456_v40  ;;  %v3503_v31 = vld [vmem:[%s4593_s1 + $0x2a0] sm:$0xff]   ;;  %v3512_v40 = vld [vmem:[%s4593_s1 + $0x248] sm:$0xff]   ;;  %v3537_v9 = vld [vmem:[%s4593_s1 + $0x3d8] sm:$0xff]  }
  0x22   :  { %3138 = vmatprep.subr.bf16.mxu1 %v3457_v41  ;;  %v3513_v41 = vld [vmem:[%s4593_s1 + $0x2c8] sm:$0xff]   ;;  %v3541_v13 = vld [vmem:[%s4593_s1 + $0x3d0] sm:$0xff]  }
  0x23   :  { %2175 = vmatmul.mubr.bf16.vlgmr.msra.gmra.mxu0 %v55_v37  ;;  %v3509_v37 = vld [vmem:[%s4593_s1 + $0x2d0] sm:$0xff]  }
  0x24   :  { %2215 = vmatmul.mubr.bf16.vlgmr.msra.gmra.mxu1 %v57_v39  ;;  %3117 = vmatpush3.bf16.msra.mxu0 %v3458_v42  ;;  %v3511_v39 = vld [vmem:[%s4593_s1 + $0x290] sm:$0xff]   ;;  %v3514_v42 = vld [vmem:[%s4593_s1 + $0x208] sm:$0xff]  }
  0x25   :  { %3139 = vmatpush3.bf16.msra.mxu1 %v3459_v43  ;;  %3118 = vmatprep.subr.bf16.mxu0 %v3460_v44  ;;  %v3515_v43 = vld [vmem:[%s4593_s1 + $0x288] sm:$0xff]   ;;  %v3516_v44 = vld [vmem:[%s4593_s1 + $0x240] sm:$0xff]  }
  0x26   :  { %3140 = vmatprep.subr.bf16.mxu1 %v3461_v45  ;;  %2254 = vmatprep.mubr.bf16.mxu0 %v60_v10  ;;  %v3517_v45 = vld [vmem:[%s4593_s1 + $0x2c0] sm:$0xff]   ;;  %v3538_v10 = vld [vmem:[%s4593_s1 + $0x318] sm:$0xff]  }
  0x27   :  { %2294 = vmatprep.mubr.bf16.mxu1 %v62_v11  ;;  %v3539_v11 = vld [vmem:[%s4593_s1 + $0x398] sm:$0xff]  }
  0x28   :  { %3119 = vmatpush3.bf16.msra.mxu0 %v3462_v46  ;;  %v3518_v46 = vld [vmem:[%s4593_s1 + $0x200] sm:$0xff]  }
  0x29   :  { %3141 = vmatpush3.bf16.msra.mxu1 %v3463_v47  ;;  %3120 = vmatprep.subr.bf16.mxu0 %v3464_v48  ;;  %v3519_v47 = vld [vmem:[%s4593_s1 + $0x280] sm:$0xff]   ;;  %v32_v48 = vld [vmem:[%s4594_s0 + $0x48] sm:$0xff] }
  0x2a   :  { %3142 = vmatprep.subr.bf16.mxu1 %v3465_v49  ;;  %v64_v49 = vpack.c.bf16 %v32_v48, %v32_v48  ;;  %v3568_v48 = vld [vmem:[%s4593_s1 + $0x458] sm:$0xff]  }
  0x2c   :  { %3121 = vmatpush3.bf16.msra.mxu0 %v3466_v50  ;;  %v34_v50 = vld [vmem:[%s4594_s0 + $0x58] sm:$0xff] }
  0x2d   :  { %3143 = vmatpush3.bf16.msra.mxu1 %v3467_v51  ;;  %3122 = vmatprep.subr.bf16.mxu0 %v3468_v52  ;;  %v31_v51 = vld [vmem:[%s4594_s0 + $0x40] sm:$0xff]  ;;  %v33_v52 = vld [vmem:[%s4594_s0 + $0x50] sm:$0xff] }
  0x2e   :  { %3144 = vmatprep.subr.bf16.mxu1 %v3469_v53  ;;  %v66_v53 = vpack.c.bf16 %v34_v50, %v34_v50  ;;  %v3570_v50 = vld [vmem:[%s4593_s1 + $0x418] sm:$0xff]  }
  0x30   :  { %3123 = vmatpush3.bf16.msra.mxu0 %v3470_v54  ;;  %v63_v54 = vpack.c.bf16 %v31_v51, %v31_v51  ;;  %v3571_v51 = vld [vmem:[%s4593_s1 + $0x498] sm:$0xff]  }
  0x31   :  { %3145 = vmatpush3.bf16.msra.mxu1 %v3471_v55  ;;  %3124 = vmatprep.subr.bf16.mxu0 %v3472_v56  ;;  %v65_v55 = vpack.c.bf16 %v33_v52, %v33_v52  ;;  %v3520_v56 = vld [vmem:[%s4593_s1 + $0x378] sm:$0xff]   ;;  %v3572_v52 = vld [vmem:[%s4593_s1 + $0x450] sm:$0xff]  }
  0x32   :  { %3146 = vmatprep.subr.bf16.mxu1 %v3473_v57  ;;  %v3521_v57 = vld [vmem:[%s4593_s1 + $0x3f8] sm:$0xff]  }
  0x34   :  { %3125 = vmatpush3.bf16.msra.mxu0 %v3474_v58  ;;  %v3522_v58 = vld [vmem:[%s4593_s1 + $0x338] sm:$0xff]  }
  0x35   :  { %3147 = vmatpush3.bf16.msra.mxu1 %v3475_v59  ;;  %3126 = vmatprep.subr.bf16.mxu0 %v3476_v60  ;;  %v3523_v59 = vld [vmem:[%s4593_s1 + $0x3b8] sm:$0xff]   ;;  %v3524_v60 = vld [vmem:[%s4593_s1 + $0x370] sm:$0xff]  }
  0x36   :  { %3148 = vmatprep.subr.bf16.mxu1 %v3477_v61  ;;  %v3525_v61 = vld [vmem:[%s4593_s1 + $0x3f0] sm:$0xff]  }
  0x38   :  { %3127 = vmatpush3.bf16.msra.mxu0 %v3478_v62  ;;  %v3526_v62 = vld [vmem:[%s4593_s1 + $0x330] sm:$0xff]  }
  0x39   :  { %3149 = vmatpush3.bf16.msra.mxu1 %v3479_v63  ;;  %3128 = vmatprep.subr.bf16.mxu0 %v3480_v0  ;;  %v3527_v63 = vld [vmem:[%s4593_s1 + $0x3b0] sm:$0xff]   ;;  %v3528_v0 = vld [vmem:[%s4593_s1 + $0x368] sm:$0xff]  }
  0x3a   :  { %3150 = vmatprep.subr.bf16.mxu1 %v3481_v1  ;;  %v3529_v1 = vld [vmem:[%s4593_s1 + $0x3e8] sm:$0xff]  }
  0x3c   :  { %3129 = vmatpush3.bf16.msra.mxu0 %v3482_v2  ;;  %v3530_v2 = vld [vmem:[%s4593_s1 + $0x328] sm:$0xff]  }
  0x3d   :  { %3151 = vmatpush3.bf16.msra.mxu1 %v3483_v3  ;;  %3130 = vmatprep.subr.bf16.mxu0 %v3484_v4  ;;  %v3531_v3 = vld [vmem:[%s4593_s1 + $0x3a8] sm:$0xff]   ;;  %v3532_v4 = vld [vmem:[%s4593_s1 + $0x360] sm:$0xff]  }
  0x3e   :  { %3152 = vmatprep.subr.bf16.mxu1 %v3485_v5  ;;  %v3533_v5 = vld [vmem:[%s4593_s1 + $0x3e0] sm:$0xff]  }
  0x40   :  { %3131 = vmatpush3.bf16.msra.mxu0 %v3486_v6  ;;  %v3534_v6 = vld [vmem:[%s4593_s1 + $0x320] sm:$0xff]  }
  0x41   :  { %3153 = vmatpush3.bf16.msra.mxu1 %v3487_v7  ;;  %3160 = vmatprep.subr.bf16.mxu0 %v3488_v16  ;;  %v3535_v7 = vld [vmem:[%s4593_s1 + $0x3a0] sm:$0xff]   ;;  %v3544_v16 = vld [vmem:[%s4593_s1 + $0x348] sm:$0xff]  }
  0x42   :  { %3182 = vmatprep.subr.bf16.mxu1 %v3489_v17  ;;  %v3545_v17 = vld [vmem:[%s4593_s1 + $0x3c8] sm:$0xff]  }
  0x43   :  { %2255 = vmatmul.mubr.bf16.vlgmr.msra.gmra.mxu0 %v59_v14  ;;  %v3542_v14 = vld [vmem:[%s4593_s1 + $0x310] sm:$0xff]  }
  0x44   :  { %2295 = vmatmul.mubr.bf16.vlgmr.msra.gmra.mxu1 %v61_v15  ;;  %3161 = vmatpush3.bf16.msra.mxu0 %v3490_v18  ;;  %v3543_v15 = vld [vmem:[%s4593_s1 + $0x390] sm:$0xff]   ;;  %v3546_v18 = vld [vmem:[%s4593_s1 + $0x308] sm:$0xff]  }
  0x45   :  { %3183 = vmatpush3.bf16.msra.mxu1 %v3491_v19  ;;  %3162 = vmatprep.subr.bf16.mxu0 %v3492_v20  ;;  %v3547_v19 = vld [vmem:[%s4593_s1 + $0x388] sm:$0xff]   ;;  %v3548_v20 = vld [vmem:[%s4593_s1 + $0x340] sm:$0xff]  }
  0x46   :  { %3184 = vmatprep.subr.bf16.mxu1 %v3493_v21  ;;  %2334 = vmatprep.mubr.bf16.mxu0 %v64_v49  ;;  %v3549_v21 = vld [vmem:[%s4593_s1 + $0x3c0] sm:$0xff]   ;;  %v3569_v49 = vld [vmem:[%s4593_s1 + $0x4d8] sm:$0xff]  }
  0x47   :  { %2374 = vmatprep.mubr.bf16.mxu1 %v66_v53  ;;  %v3573_v53 = vld [vmem:[%s4593_s1 + $0x4d0] sm:$0xff]  }
  0x48   :  { %3163 = vmatpush3.bf16.msra.mxu0 %v3494_v22  ;;  %v3550_v22 = vld [vmem:[%s4593_s1 + $0x300] sm:$0xff]  }
  0x49   :  { %3185 = vmatpush3.bf16.msra.mxu1 %v3495_v23  ;;  %3164 = vmatprep.subr.bf16.mxu0 %v3496_v24  ;;  %v3551_v23 = vld [vmem:[%s4593_s1 + $0x380] sm:$0xff]   ;;  %v36_v24 = vld [vmem:[%s4594_s0 + $0x68] sm:$0xff] }
  0x4a   :  { %3186 = vmatprep.subr.bf16.mxu1 %v3497_v25  ;;  %v38_v25 = vld [vmem:[%s4594_s0 + $0x78] sm:$0xff] }
  0x4c   :  { %3165 = vmatpush3.bf16.msra.mxu0 %v3498_v26  ;;  %v35_v26 = vld [vmem:[%s4594_s0 + $0x60] sm:$0xff] }
  0x4d   :  { %3187 = vmatpush3.bf16.msra.mxu1 %v3499_v27  ;;  %3166 = vmatprep.subr.bf16.mxu0 %v3500_v28  ;;  %v68_v27 = vpack.c.bf16 %v36_v24, %v36_v24  ;;  %v70_v28 = vpack.c.bf16 %v38_v25, %v38_v25  ;;  %v3600_v24 = vld [vmem:[%s4593_s1 + $0x558] sm:$0xff]  }
  0x4e   :  { %3188 = vmatprep.subr.bf16.mxu1 %v3501_v29  ;;  %v67_v29 = vpack.c.bf16 %v35_v26, %v35_v26  ;;  %v3601_v25 = vld [vmem:[%s4593_s1 + $0x5d8] sm:$0xff]  }
  0x4f   :  { %v3602_v26 = vld [vmem:[%s4593_s1 + $0x518] sm:$0xff]  }
  0x50   :  { %3167 = vmatpush3.bf16.msra.mxu0 %v3502_v30  ;;  %v37_v30 = vld [vmem:[%s4594_s0 + $0x70] sm:$0xff] }
  0x51   :  { %3189 = vmatpush3.bf16.msra.mxu1 %v3503_v31  ;;  %3168 = vmatprep.subr.bf16.mxu0 %v3504_v32  ;;  %v69_v31 = vpack.c.bf16 %v37_v30, %v37_v30  ;;  %v3552_v32 = vld [vmem:[%s4593_s1 + $0x478] sm:$0xff]   ;;  %v3606_v30 = vld [vmem:[%s4593_s1 + $0x510] sm:$0xff]  }
  0x52   :  { %3190 = vmatprep.subr.bf16.mxu1 %v3505_v33  ;;  %v3553_v33 = vld [vmem:[%s4593_s1 + $0x4f8] sm:$0xff]  }
  0x54   :  { %3169 = vmatpush3.bf16.msra.mxu0 %v3506_v34  ;;  %v3554_v34 = vld [vmem:[%s4593_s1 + $0x438] sm:$0xff]  }
  0x55   :  { %3191 = vmatpush3.bf16.msra.mxu1 %v3507_v35  ;;  %3170 = vmatprep.subr.bf16.mxu0 %v3508_v36  ;;  %v3555_v35 = vld [vmem:[%s4593_s1 + $0x4b8] sm:$0xff]   ;;  %v3556_v36 = vld [vmem:[%s4593_s1 + $0x470] sm:$0xff]  }
  0x56   :  { %3192 = vmatprep.subr.bf16.mxu1 %v3509_v37  ;;  %v3557_v37 = vld [vmem:[%s4593_s1 + $0x4f0] sm:$0xff]  }
  0x58   :  { %3171 = vmatpush3.bf16.msra.mxu0 %v3510_v38  ;;  %v3558_v38 = vld [vmem:[%s4593_s1 + $0x430] sm:$0xff]  }
  0x59   :  { %3193 = vmatpush3.bf16.msra.mxu1 %v3511_v39  ;;  %3172 = vmatprep.subr.bf16.mxu0 %v3512_v40  ;;  %v3559_v39 = vld [vmem:[%s4593_s1 + $0x4b0] sm:$0xff]   ;;  %v3560_v40 = vld [vmem:[%s4593_s1 + $0x468] sm:$0xff]  }
  0x5a   :  { %3194 = vmatprep.subr.bf16.mxu1 %v3513_v41  ;;  %v3561_v41 = vld [vmem:[%s4593_s1 + $0x4e8] sm:$0xff]  }
  0x5c   :  { %3173 = vmatpush3.bf16.msra.mxu0 %v3514_v42  ;;  %v3562_v42 = vld [vmem:[%s4593_s1 + $0x428] sm:$0xff]  }
  0x5d   :  { %3195 = vmatpush3.bf16.msra.mxu1 %v3515_v43  ;;  %3174 = vmatprep.subr.bf16.mxu0 %v3516_v44  ;;  %v3563_v43 = vld [vmem:[%s4593_s1 + $0x4a8] sm:$0xff]   ;;  %v3564_v44 = vld [vmem:[%s4593_s1 + $0x460] sm:$0xff]  }
  0x5e   :  { %3196 = vmatprep.subr.bf16.mxu1 %v3517_v45  ;;  %v3565_v45 = vld [vmem:[%s4593_s1 + $0x4e0] sm:$0xff]  }
  0x60   :  { %3175 = vmatpush3.bf16.msra.mxu0 %v3518_v46  ;;  %v3566_v46 = vld [vmem:[%s4593_s1 + $0x420] sm:$0xff]  }
  0x61   :  { %3197 = vmatpush3.bf16.msra.mxu1 %v3519_v47  ;;  %3204 = vmatprep.subr.bf16.mxu0 %v3520_v56  ;;  %v3567_v47 = vld [vmem:[%s4593_s1 + $0x4a0] sm:$0xff]   ;;  %v3576_v56 = vld [vmem:[%s4593_s1 + $0x448] sm:$0xff]  }
  0x62   :  { %3226 = vmatprep.subr.bf16.mxu1 %v3521_v57  ;;  %v3577_v57 = vld [vmem:[%s4593_s1 + $0x4c8] sm:$0xff]  }
  0x63   :  { %2335 = vmatmul.mubr.bf16.vlgmr.msra.gmra.mxu0 %v63_v54  ;;  %v3574_v54 = vld [vmem:[%s4593_s1 + $0x410] sm:$0xff]  }
  0x64   :  { %2375 = vmatmul.mubr.bf16.vlgmr.msra.gmra.mxu1 %v65_v55  ;;  %3205 = vmatpush3.bf16.msra.mxu0 %v3522_v58  ;;  %v3575_v55 = vld [vmem:[%s4593_s1 + $0x490] sm:$0xff]   ;;  %v3578_v58 = vld [vmem:[%s4593_s1 + $0x408] sm:$0xff]  }
  0x65   :  { %3227 = vmatpush3.bf16.msra.mxu1 %v3523_v59  ;;  %3206 = vmatprep.subr.bf16.mxu0 %v3524_v60  ;;  %v3579_v59 = vld [vmem:[%s4593_s1 + $0x488] sm:$0xff]   ;;  %v3580_v60 = vld [vmem:[%s4593_s1 + $0x440] sm:$0xff]  }
  0x66   :  { %3228 = vmatprep.subr.bf16.mxu1 %v3525_v61  ;;  %2414 = vmatprep.mubr.bf16.mxu0 %v68_v27  ;;  %v3581_v61 = vld [vmem:[%s4593_s1 + $0x4c0] sm:$0xff]   ;;  %v3603_v27 = vld [vmem:[%s4593_s1 + $0x598] sm:$0xff]  }
  0x67   :  { %2454 = vmatprep.mubr.bf16.mxu1 %v70_v28  ;;  %v3604_v28 = vld [vmem:[%s4593_s1 + $0x550] sm:$0xff]  }
  0x68   :  { %3207 = vmatpush3.bf16.msra.mxu0 %v3526_v62  ;;  %v3582_v62 = vld [vmem:[%s4593_s1 + $0x400] sm:$0xff]  }
  0x69   :  { %3229 = vmatpush3.bf16.msra.mxu1 %v3527_v63  ;;  %3208 = vmatprep.subr.bf16.mxu0 %v3528_v0  ;;  %v3583_v63 = vld [vmem:[%s4593_s1 + $0x480] sm:$0xff]   ;;  %v40_v0 = vld [vmem:[%s4594_s0 + $0x88] sm:$0xff] }
  0x6a   :  { %3230 = vmatprep.subr.bf16.mxu1 %v3529_v1  ;;  %v42_v1 = vld [vmem:[%s4594_s0 + $0x98] sm:$0xff] }
  0x6c   :  { %3209 = vmatpush3.bf16.msra.mxu0 %v3530_v2  ;;  %v72_v2 = vpack.c.bf16 %v40_v0, %v40_v0  ;;  %v3632_v0 = vld [vmem:[%s4593_s1 + $0x658] sm:$0xff]  }
  0x6d   :  { %3231 = vmatpush3.bf16.msra.mxu1 %v3531_v3  ;;  %3210 = vmatprep.subr.bf16.mxu0 %v3532_v4  ;;  %v74_v3 = vpack.c.bf16 %v42_v1, %v42_v1  ;;  %v39_v4 = vld [vmem:[%s4594_s0 + $0x80] sm:$0xff]  ;;  %v3633_v1 = vld [vmem:[%s4593_s1 + $0x6d8] sm:$0xff]  }
  0x6e   :  { %3232 = vmatprep.subr.bf16.mxu1 %v3533_v5  ;;  %v41_v5 = vld [vmem:[%s4594_s0 + $0x90] sm:$0xff] }
  0x70   :  { %3211 = vmatpush3.bf16.msra.mxu0 %v3534_v6  ;;  %v71_v6 = vpack.c.bf16 %v39_v4, %v39_v4  ;;  %v3636_v4 = vld [vmem:[%s4593_s1 + $0x650] sm:$0xff]  }
  0x71   :  { %3233 = vmatpush3.bf16.msra.mxu1 %v3535_v7  ;;  %3212 = vmatprep.subr.bf16.mxu0 %v3536_v8  ;;  %v73_v7 = vpack.c.bf16 %v41_v5, %v41_v5  ;;  %v3584_v8 = vld [vmem:[%s4593_s1 + $0x578] sm:$0xff]   ;;  %v3637_v5 = vld [vmem:[%s4593_s1 + $0x6d0] sm:$0xff]  }
  0x72   :  { %3234 = vmatprep.subr.bf16.mxu1 %v3537_v9  ;;  %v3585_v9 = vld [vmem:[%s4593_s1 + $0x5f8] sm:$0xff]  }
  0x74   :  { %3213 = vmatpush3.bf16.msra.mxu0 %v3538_v10  ;;  %v3586_v10 = vld [vmem:[%s4593_s1 + $0x538] sm:$0xff]  }
  0x75   :  { %3235 = vmatpush3.bf16.msra.mxu1 %v3539_v11  ;;  %3214 = vmatprep.subr.bf16.mxu0 %v3540_v12  ;;  %v3587_v11 = vld [vmem:[%s4593_s1 + $0x5b8] sm:$0xff]   ;;  %v3588_v12 = vld [vmem:[%s4593_s1 + $0x570] sm:$0xff]  }
  0x76   :  { %3236 = vmatprep.subr.bf16.mxu1 %v3541_v13  ;;  %v3589_v13 = vld [vmem:[%s4593_s1 + $0x5f0] sm:$0xff]  }
  0x78   :  { %3215 = vmatpush3.bf16.msra.mxu0 %v3542_v14  ;;  %v3590_v14 = vld [vmem:[%s4593_s1 + $0x530] sm:$0xff]  }
  0x79   :  { %3237 = vmatpush3.bf16.msra.mxu1 %v3543_v15  ;;  %3216 = vmatprep.subr.bf16.mxu0 %v3544_v16  ;;  %v3591_v15 = vld [vmem:[%s4593_s1 + $0x5b0] sm:$0xff]   ;;  %v3592_v16 = vld [vmem:[%s4593_s1 + $0x568] sm:$0xff]  }
  0x7a   :  { %3238 = vmatprep.subr.bf16.mxu1 %v3545_v17  ;;  %v3593_v17 = vld [vmem:[%s4593_s1 + $0x5e8] sm:$0xff]  }
  0x7c   :  { %3217 = vmatpush3.bf16.msra.mxu0 %v3546_v18  ;;  %v3594_v18 = vld [vmem:[%s4593_s1 + $0x528] sm:$0xff]  }
  0x7d   :  { %3239 = vmatpush3.bf16.msra.mxu1 %v3547_v19  ;;  %3218 = vmatprep.subr.bf16.mxu0 %v3548_v20  ;;  %v3595_v19 = vld [vmem:[%s4593_s1 + $0x5a8] sm:$0xff]   ;;  %v3596_v20 = vld [vmem:[%s4593_s1 + $0x560] sm:$0xff]  }
  0x7e   :  { %3240 = vmatprep.subr.bf16.mxu1 %v3549_v21  ;;  %v3597_v21 = vld [vmem:[%s4593_s1 + $0x5e0] sm:$0xff]  }
  0x80   :  { %3219 = vmatpush3.bf16.msra.mxu0 %v3550_v22  ;;  %v3598_v22 = vld [vmem:[%s4593_s1 + $0x520] sm:$0xff]  }
  0x81   :  { %3241 = vmatpush3.bf16.msra.mxu1 %v3551_v23  ;;  %3248 = vmatprep.subr.bf16.mxu0 %v3552_v32  ;;  %v3599_v23 = vld [vmem:[%s4593_s1 + $0x5a0] sm:$0xff]   ;;  %v3608_v32 = vld [vmem:[%s4593_s1 + $0x548] sm:$0xff]  }
  0x82   :  { %3270 = vmatprep.subr.bf16.mxu1 %v3553_v33  ;;  %v3609_v33 = vld [vmem:[%s4593_s1 + $0x5c8] sm:$0xff]  }
  0x83   :  { %2415 = vmatmul.mubr.bf16.vlgmr.msra.gmra.mxu0 %v67_v29  ;;  %v3605_v29 = vld [vmem:[%s4593_s1 + $0x5d0] sm:$0xff]  }
  0x84   :  { %2455 = vmatmul.mubr.bf16.vlgmr.msra.gmra.mxu1 %v69_v31  ;;  %3249 = vmatpush3.bf16.msra.mxu0 %v3554_v34  ;;  %v3607_v31 = vld [vmem:[%s4593_s1 + $0x590] sm:$0xff]   ;;  %v3610_v34 = vld [vmem:[%s4593_s1 + $0x508] sm:$0xff]  }
  0x85   :  { %3271 = vmatpush3.bf16.msra.mxu1 %v3555_v35  ;;  %3250 = vmatprep.subr.bf16.mxu0 %v3556_v36  ;;  %v3611_v35 = vld [vmem:[%s4593_s1 + $0x588] sm:$0xff]   ;;  %v3612_v36 = vld [vmem:[%s4593_s1 + $0x540] sm:$0xff]  }
  0x86   :  { %3272 = vmatprep.subr.bf16.mxu1 %v3557_v37  ;;  %2494 = vmatprep.mubr.bf16.mxu0 %v72_v2  ;;  %v3613_v37 = vld [vmem:[%s4593_s1 + $0x5c0] sm:$0xff]   ;;  %v3634_v2 = vld [vmem:[%s4593_s1 + $0x618] sm:$0xff]  }
  0x87   :  { %2534 = vmatprep.mubr.bf16.mxu1 %v74_v3  ;;  %v3635_v3 = vld [vmem:[%s4593_s1 + $0x698] sm:$0xff]  }
  0x88   :  { %3251 = vmatpush3.bf16.msra.mxu0 %v3558_v38  ;;  %v3614_v38 = vld [vmem:[%s4593_s1 + $0x500] sm:$0xff]  }
  0x89   :  { %3273 = vmatpush3.bf16.msra.mxu1 %v3559_v39  ;;  %3252 = vmatprep.subr.bf16.mxu0 %v3560_v40  ;;  %v3615_v39 = vld [vmem:[%s4593_s1 + $0x580] sm:$0xff]   ;;  %v44_v40 = vld [vmem:[%s4594_s0 + $0xa8] sm:$0xff] }
  0x8a   :  { %3274 = vmatprep.subr.bf16.mxu1 %v3561_v41  ;;  %v76_v41 = vpack.c.bf16 %v44_v40, %v44_v40  ;;  %v3652_v40 = vld [vmem:[%s4593_s1 + $0x770] sm:$0xff]  }
  0x8c   :  { %3253 = vmatpush3.bf16.msra.mxu0 %v3562_v42  ;;  %v46_v42 = vld [vmem:[%s4594_s0 + $0xb8] sm:$0xff] }
  0x8d   :  { %3275 = vmatpush3.bf16.msra.mxu1 %v3563_v43  ;;  %3254 = vmatprep.subr.bf16.mxu0 %v3564_v44  ;;  %v43_v43 = vld [vmem:[%s4594_s0 + $0xa0] sm:$0xff]  ;;  %v45_v44 = vld [vmem:[%s4594_s0 + $0xb0] sm:$0xff] }
  0x8e   :  { %3276 = vmatprep.subr.bf16.mxu1 %v3565_v45  ;;  %v78_v45 = vpack.c.bf16 %v46_v42, %v46_v42 }
  0x90   :  { %3255 = vmatpush3.bf16.msra.mxu0 %v3566_v46  ;;  %v75_v46 = vpack.c.bf16 %v43_v43, %v43_v43  ;;  %v3654_v43 = vld [vmem:[%s4593_s1 + $0x730] sm:$0xff]  }
  0x91   :  { %3277 = vmatpush3.bf16.msra.mxu1 %v3567_v47  ;;  %3256 = vmatprep.subr.bf16.mxu0 %v3568_v48  ;;  %v77_v47 = vpack.c.bf16 %v45_v44, %v45_v44  ;;  %v3616_v48 = vld [vmem:[%s4593_s1 + $0x678] sm:$0xff]   ;;  %v3655_v44 = vld [vmem:[%s4593_s1 + $0x7b0] sm:$0xff]  }
  0x92   :  { %3278 = vmatprep.subr.bf16.mxu1 %v3569_v49  ;;  %v3617_v49 = vld [vmem:[%s4593_s1 + $0x6f8] sm:$0xff]  }
  0x94   :  { %3257 = vmatpush3.bf16.msra.mxu0 %v3570_v50  ;;  %v3618_v50 = vld [vmem:[%s4593_s1 + $0x638] sm:$0xff]  }
  0x95   :  { %3279 = vmatpush3.bf16.msra.mxu1 %v3571_v51  ;;  %3258 = vmatprep.subr.bf16.mxu0 %v3572_v52  ;;  %v3619_v51 = vld [vmem:[%s4593_s1 + $0x6b8] sm:$0xff]   ;;  %v3620_v52 = vld [vmem:[%s4593_s1 + $0x670] sm:$0xff]  }
  0x96   :  { %3280 = vmatprep.subr.bf16.mxu1 %v3573_v53  ;;  %v3621_v53 = vld [vmem:[%s4593_s1 + $0x6f0] sm:$0xff]  }
  0x98   :  { %3259 = vmatpush3.bf16.msra.mxu0 %v3574_v54  ;;  %v3622_v54 = vld [vmem:[%s4593_s1 + $0x630] sm:$0xff]  }
  0x99   :  { %3281 = vmatpush3.bf16.msra.mxu1 %v3575_v55  ;;  %3260 = vmatprep.subr.bf16.mxu0 %v3576_v56  ;;  %v3623_v55 = vld [vmem:[%s4593_s1 + $0x6b0] sm:$0xff]   ;;  %v3624_v56 = vld [vmem:[%s4593_s1 + $0x668] sm:$0xff]  }
  0x9a   :  { %3282 = vmatprep.subr.bf16.mxu1 %v3577_v57  ;;  %v3625_v57 = vld [vmem:[%s4593_s1 + $0x6e8] sm:$0xff]  }
  0x9c   :  { %3261 = vmatpush3.bf16.msra.mxu0 %v3578_v58  ;;  %v3626_v58 = vld [vmem:[%s4593_s1 + $0x628] sm:$0xff]  }
  0x9d   :  { %3283 = vmatpush3.bf16.msra.mxu1 %v3579_v59  ;;  %3262 = vmatprep.subr.bf16.mxu0 %v3580_v60  ;;  %v3627_v59 = vld [vmem:[%s4593_s1 + $0x6a8] sm:$0xff]   ;;  %v3628_v60 = vld [vmem:[%s4593_s1 + $0x660] sm:$0xff]  }
  0x9e   :  { %3284 = vmatprep.subr.bf16.mxu1 %v3581_v61  ;;  %v3629_v61 = vld [vmem:[%s4593_s1 + $0x6e0] sm:$0xff]  }
  0xa0   :  { %3263 = vmatpush3.bf16.msra.mxu0 %v3582_v62  ;;  %v3630_v62 = vld [vmem:[%s4593_s1 + $0x620] sm:$0xff]  }
  0xa1   :  { %3285 = vmatpush3.bf16.msra.mxu1 %v3583_v63  ;;  %3292 = vmatprep.subr.bf16.mxu0 %v3584_v8  ;;  %v3631_v63 = vld [vmem:[%s4593_s1 + $0x6a0] sm:$0xff]   ;;  %v3640_v8 = vld [vmem:[%s4593_s1 + $0x648] sm:$0xff]  }
  0xa2   :  { %3314 = vmatprep.subr.bf16.mxu1 %v3585_v9  ;;  %v3641_v9 = vld [vmem:[%s4593_s1 + $0x6c8] sm:$0xff]  }
  0xa3   :  { %2495 = vmatmul.mubr.bf16.vlgmr.msra.gmra.mxu0 %v71_v6  ;;  %v3638_v6 = vld [vmem:[%s4593_s1 + $0x610] sm:$0xff]  }
  0xa4   :  { %2535 = vmatmul.mubr.bf16.vlgmr.msra.gmra.mxu1 %v73_v7  ;;  %3293 = vmatpush3.bf16.msra.mxu0 %v3586_v10  ;;  %v3639_v7 = vld [vmem:[%s4593_s1 + $0x690] sm:$0xff]   ;;  %v3642_v10 = vld [vmem:[%s4593_s1 + $0x608] sm:$0xff]  }
  0xa5   :  { %3315 = vmatpush3.bf16.msra.mxu1 %v3587_v11  ;;  %3294 = vmatprep.subr.bf16.mxu0 %v3588_v12  ;;  %v3643_v11 = vld [vmem:[%s4593_s1 + $0x688] sm:$0xff]   ;;  %v3644_v12 = vld [vmem:[%s4593_s1 + $0x640] sm:$0xff]  }
  0xa6   :  { %3316 = vmatprep.subr.bf16.mxu1 %v3589_v13  ;;  %2574 = vmatprep.mubr.bf16.mxu0 %v76_v41  ;;  %v3653_v41 = vld [vmem:[%s4593_s1 + $0x7f0] sm:$0xff]  }
  0xa7   :  { %2614 = vmatprep.mubr.bf16.mxu1 %v78_v45  ;;  %v3656_v45 = vld [vmem:[%s4593_s1 + $0x768] sm:$0xff]  }
  0xa8   :  { %3295 = vmatpush3.bf16.msra.mxu0 %v3590_v14 }
  0xa9   :  { %3317 = vmatpush3.bf16.msra.mxu1 %v3591_v15  ;;  %3296 = vmatprep.subr.bf16.mxu0 %v3592_v16  ;;  %v3645_v15 = vld [vmem:[%s4593_s1 + $0x6c0] sm:$0xff]  }
  0xaa   :  { %3318 = vmatprep.subr.bf16.mxu1 %v3593_v17  ;;  %v3646_v16 = vld [vmem:[%s4593_s1 + $0x600] sm:$0xff]  }
  0xac   :  { %3297 = vmatpush3.bf16.msra.mxu0 %v3594_v18 }
  0xad   :  { %3319 = vmatpush3.bf16.msra.mxu1 %v3595_v19  ;;  %3298 = vmatprep.subr.bf16.mxu0 %v3596_v20  ;;  %v3647_v19 = vld [vmem:[%s4593_s1 + $0x680] sm:$0xff]  }
  0xae   :  { %3320 = vmatprep.subr.bf16.mxu1 %v3597_v21 }
  0xb0   :  { %3299 = vmatpush3.bf16.msra.mxu0 %v3598_v22  ;;  %v48_v22 = vld [vmem:[%s4594_s0 + $0xc8] sm:$0xff] }
  0xb1   :  { %3321 = vmatpush3.bf16.msra.mxu1 %v3599_v23  ;;  %3300 = vmatprep.subr.bf16.mxu0 %v3600_v24  ;;  %v50_v23 = vld [vmem:[%s4594_s0 + $0xd8] sm:$0xff]  ;;  %v47_v24 = vld [vmem:[%s4594_s0 + $0xc0] sm:$0xff] }
  0xb2   :  { %3322 = vmatprep.subr.bf16.mxu1 %v3601_v25 }
  0xb4   :  { %3301 = vmatpush3.bf16.msra.mxu0 %v3602_v26 }
  0xb5   :  { %3323 = vmatpush3.bf16.msra.mxu1 %v3603_v27  ;;  %3302 = vmatprep.subr.bf16.mxu0 %v3604_v28  ;;  %v80_v27 = vpack.c.bf16 %v48_v22, %v48_v22  ;;  %v82_v28 = vpack.c.bf16 %v50_v23, %v50_v23 }
  0xb6   :  { %3324 = vmatprep.subr.bf16.mxu1 %v3605_v29  ;;  %v79_v29 = vpack.c.bf16 %v47_v24, %v47_v24 }
  0xb8   :  { %3303 = vmatpush3.bf16.msra.mxu0 %v3606_v30  ;;  %v49_v30 = vld [vmem:[%s4594_s0 + $0xd0] sm:$0xff] }
  0xb9   :  { %3325 = vmatpush3.bf16.msra.mxu1 %v3607_v31  ;;  %3304 = vmatprep.subr.bf16.mxu0 %v3608_v32  ;;  %v81_v31 = vpack.c.bf16 %v49_v30, %v49_v30  ;;  %v3648_v32 = vld [vmem:[%s4593_s1 + $0x778] sm:$0xff]  }
  0xba   :  { %3326 = vmatprep.subr.bf16.mxu1 %v3609_v33 }
  0xbc   :  { %3305 = vmatpush3.bf16.msra.mxu0 %v3610_v34 }
  0xbd   :  { %3327 = vmatpush3.bf16.msra.mxu1 %v3611_v35  ;;  %3306 = vmatprep.subr.bf16.mxu0 %v3612_v36  ;;  %v3649_v35 = vld [vmem:[%s4593_s1 + $0x7f8] sm:$0xff]  }
  0xbe   :  { %3328 = vmatprep.subr.bf16.mxu1 %v3613_v37  ;;  %v3650_v36 = vld [vmem:[%s4593_s1 + $0x738] sm:$0xff]  }
  0xbf   :  { %v3651_v37 = vld [vmem:[%s4593_s1 + $0x7b8] sm:$0xff]  }
  0xc0   :  { %3307 = vmatpush3.bf16.msra.mxu0 %v3614_v38  ;;  %v2813_v38 = vld [vmem:[%s4595_s2] ss:$0 sm:$0xff] }
  0xc1   :  { %3329 = vmatpush3.bf16.msra.mxu1 %v3615_v39  ;;  %3336 = vmatprep.subr.bf16.mxu0 %v3616_v48  ;;  %v3659_v48 = vld [vmem:[%s4593_s1 + $0x7a8] sm:$0xff]  }
  0xc2   :  { %3358 = vmatprep.subr.bf16.mxu1 %v3617_v49  ;;  %v3660_v49 = vld [vmem:[%s4593_s1 + $0x760] sm:$0xff]  }
  0xc3   :  { %2575 = vmatmul.mubr.bf16.vlgmr.msra.gmra.mxu0 %v75_v46  ;;  %v3657_v46 = vld [vmem:[%s4593_s1 + $0x7e8] sm:$0xff]  }
  0xc4   :  { %2615 = vmatmul.mubr.bf16.vlgmr.msra.gmra.mxu1 %v77_v47  ;;  %3337 = vmatpush3.bf16.msra.mxu0 %v3618_v50  ;;  %v3658_v47 = vld [vmem:[%s4593_s1 + $0x728] sm:$0xff]   ;;  %v3661_v50 = vld [vmem:[%s4593_s1 + $0x7e0] sm:$0xff]  }
  0xc5   :  { %3359 = vmatpush3.bf16.msra.mxu1 %v3619_v51  ;;  %3338 = vmatprep.subr.bf16.mxu0 %v3620_v52  ;;  %v3662_v51 = vld [vmem:[%s4593_s1 + $0x720] sm:$0xff]  }
  0xc6   :  { %3360 = vmatprep.subr.bf16.mxu1 %v3621_v53  ;;  %2654 = vmatprep.mubr.bf16.mxu0 %v80_v27  ;;  %v3663_v52 = vld [vmem:[%s4593_s1 + $0x7a0] sm:$0xff]   ;;  %v3664_v53 = vld [vmem:[%s4593_s1 + $0x758] sm:$0xff]  }
  0xc7   :  { %2694 = vmatprep.mubr.bf16.mxu1 %v82_v28 }
  0xc8   :  { %3339 = vmatpush3.bf16.msra.mxu0 %v3622_v54  ;;  %v3665_v54 = vld [vmem:[%s4593_s1 + $0x7d8] sm:$0xff]  }
  0xc9   :  { %3361 = vmatpush3.bf16.msra.mxu1 %v3623_v55  ;;  %3340 = vmatprep.subr.bf16.mxu0 %v3624_v56  ;;  %v3666_v55 = vld [vmem:[%s4593_s1 + $0x718] sm:$0xff]  }
  0xca   :  { %3362 = vmatprep.subr.bf16.mxu1 %v3625_v57  ;;  %v3667_v56 = vld [vmem:[%s4593_s1 + $0x798] sm:$0xff]   ;;  %v3668_v57 = vld [vmem:[%s4593_s1 + $0x750] sm:$0xff]  }
  0xcc   :  { %3341 = vmatpush3.bf16.msra.mxu0 %v3626_v58  ;;  %v3669_v58 = vld [vmem:[%s4593_s1 + $0x7d0] sm:$0xff]  }
  0xcd   :  { %3363 = vmatpush3.bf16.msra.mxu1 %v3627_v59  ;;  %3342 = vmatprep.subr.bf16.mxu0 %v3628_v60  ;;  %v3670_v59 = vld [vmem:[%s4593_s1 + $0x710] sm:$0xff]  }
  0xce   :  { %3364 = vmatprep.subr.bf16.mxu1 %v3629_v61  ;;  %v3671_v60 = vld [vmem:[%s4593_s1 + $0x790] sm:$0xff]   ;;  %v3672_v61 = vld [vmem:[%s4593_s1 + $0x748] sm:$0xff]  }
  0xd0   :  { %3343 = vmatpush3.bf16.msra.mxu0 %v3630_v62  ;;  %v3673_v62 = vld [vmem:[%s4593_s1 + $0x7c8] sm:$0xff]  }
  0xd1   :  { %3365 = vmatpush3.bf16.msra.mxu1 %v3631_v63  ;;  %3344 = vmatprep.subr.bf16.mxu0 %v3632_v0  ;;  %v3674_v63 = vld [vmem:[%s4593_s1 + $0x708] sm:$0xff]  }
  0xd2   :  { %3366 = vmatprep.subr.bf16.mxu1 %v3633_v1  ;;  %v3675_v0 = vld [vmem:[%s4593_s1 + $0x788] sm:$0xff]  }
  0xd4   :  { %3345 = vmatpush3.bf16.msra.mxu0 %v3634_v2  ;;  %v3676_v2 = vld [vmem:[%s4593_s1 + $0x740] sm:$0xff]  }
  0xd5   :  { %3367 = vmatpush3.bf16.msra.mxu1 %v3635_v3  ;;  %3346 = vmatprep.subr.bf16.mxu0 %v3636_v4  ;;  %v3677_v4 = vld [vmem:[%s4593_s1 + $0x7c0] sm:$0xff]  }
  0xd6   :  { %3368 = vmatprep.subr.bf16.mxu1 %v3637_v5 }
  0xd8   :  { %3347 = vmatpush3.bf16.msra.mxu0 %v3638_v6  ;;  %v3678_v6 = vld [vmem:[%s4593_s1 + $0x700] sm:$0xff]  }
  0xd9   :  { %3369 = vmatpush3.bf16.msra.mxu1 %v3639_v7  ;;  %3348 = vmatprep.subr.bf16.mxu0 %v3640_v8 }
  0xda   :  { %3370 = vmatprep.subr.bf16.mxu1 %v3641_v9  ;;  %v3679_v9 = vld [vmem:[%s4593_s1 + $0x780] sm:$0xff]  }
  0xdc   :  { %3349 = vmatpush3.bf16.msra.mxu0 %v3642_v10  ;;  %v52_v10 = vld [vmem:[%s4594_s0 + $0xe8] sm:$0xff] }
  0xdd   :  { %3371 = vmatpush3.bf16.msra.mxu1 %v3643_v11  ;;  %3350 = vmatprep.subr.bf16.mxu0 %v3644_v12 }
  0xde   :  { %3372 = vmatprep.subr.bf16.mxu1 %v3645_v15  ;;  %v51_v15 = vld [vmem:[%s4594_s0 + $0xe0] sm:$0xff] }
  0xe0   :  { %3351 = vmatpush3.bf16.msra.mxu0 %v3646_v16  ;;  %v53_v16 = vld [vmem:[%s4594_s0 + $0xf0] sm:$0xff] }
  0xe1   :  { %3373 = vmatpush3.bf16.msra.mxu1 %v3647_v19  ;;  %3380 = vmatprep.subr.bf16.mxu0 %v3648_v32 }
  0xe2   :  { %3402 = vmatprep.subr.bf16.mxu1 %v3649_v35 }
  0xe3   :  { %v3088_v13 = vpop.f32.mrf.mxu0  ;;  %2655 = vmatmul.mubr.bf16.vlgmr.msra.gmra.mxu0 %v79_v29 }
  0xe4   :  { %v3110_v14 = vpop.f32.mrf.mxu1  ;;  %2695 = vmatmul.mubr.bf16.vlgmr.msra.gmra.mxu1 %v81_v31  ;;  %3381 = vmatpush3.bf16.msra.mxu0 %v3650_v36 }
  0xe5   :  { %v3089_v17 = vpop.f32.mrf.mxu0  ;;  %3403 = vmatpush3.bf16.msra.mxu1 %v3651_v37  ;;  %3382 = vmatprep.subr.bf16.mxu0 %v3652_v40 }
  0xe6   :  { %v3111_v18 = vpop.f32.mrf.mxu1  ;;  %v3090_v20 = vadd.f32 %v3089_v17, %v3088_v13  ;;  %3404 = vmatprep.subr.bf16.mxu1 %v3653_v41  ;;  %v84_v13 = vpack.c.bf16 %v52_v10, %v52_v10 }
  0xe7   :  { %v3112_v21 = vadd.f32 %v3111_v18, %v3110_v14  ;;  %v3091_v25 = vpop.f32.mrf.mxu0  ;;  %v54_v14 = vld [vmem:[%s4594_s0 + $0xf8] sm:$0xff] }
  0xe8   :  { %v3113_v26 = vpop.f32.mrf.mxu1  ;;  %v2177_v39 = vadd.f32 %v3090_v20, %v2813_v38  ;;  %3383 = vmatpush3.bf16.msra.mxu0 %v3654_v43  ;;  %v86_v19 = vpack.c.bf16 %v54_v14, %v54_v14  ;;  %v83_v20 = vpack.c.bf16 %v51_v15, %v51_v15  ;;  %2734 = vmatprep.mubr.bf16.mxu0 %v84_v13 }
  0xe9   :  { %v3092_v33 = vpop.f32.mrf.mxu0  ;;  %3405 = vmatpush3.bf16.msra.mxu1 %v3655_v44  ;;  %3384 = vmatprep.subr.bf16.mxu0 %v3656_v45 }
  0xea   :  { %v3114_v34 = vpop.f32.mrf.mxu1  ;;  %v4491_v42 = vadd.f32 %v3112_v21, %v2177_v39  ;;  %3406 = vmatprep.subr.bf16.mxu1 %v3657_v46  ;;  %v85_v21 = vpack.c.bf16 %v53_v16, %v53_v16  ;;  %2774 = vmatprep.mubr.bf16.mxu1 %v86_v19 }
  0xec   :  { %3385 = vmatpush3.bf16.msra.mxu0 %v3658_v47 }
  0xed   :  { %3407 = vmatpush3.bf16.msra.mxu1 %v3659_v48  ;;  %3386 = vmatprep.subr.bf16.mxu0 %v3660_v49  ;;  %v10_v49 = vstv %s4596_s4 }
  0xee   :  { %3408 = vmatprep.subr.bf16.mxu1 %v3661_v50  ;;  %11 = vst [vmem:[#allocation2] sm:$0x1] %v10_v49 }
  0xf0   :  { %3387 = vmatpush3.bf16.msra.mxu0 %v3662_v51 }
  0xf1   :  { %3409 = vmatpush3.bf16.msra.mxu1 %v3663_v52  ;;  %3388 = vmatprep.subr.bf16.mxu0 %v3664_v53 }
  0xf2   :  { %3410 = vmatprep.subr.bf16.mxu1 %v3665_v54 }
  0xf4   :  { %3389 = vmatpush3.bf16.msra.mxu0 %v3666_v55 }
  0xf5   :  { %3411 = vmatpush3.bf16.msra.mxu1 %v3667_v56  ;;  %3390 = vmatprep.subr.bf16.mxu0 %v3668_v57 }
  0xf6   :  { %3412 = vmatprep.subr.bf16.mxu1 %v3669_v58 }
  0xf8   :  { %3391 = vmatpush3.bf16.msra.mxu0 %v3670_v59 }
  0xf9   :  { %3413 = vmatpush3.bf16.msra.mxu1 %v3671_v60  ;;  %3392 = vmatprep.subr.bf16.mxu0 %v3672_v61 }
  0xfa   :  { %3414 = vmatprep.subr.bf16.mxu1 %v3673_v62 }
  0xfc   :  { %3393 = vmatpush3.bf16.msra.mxu0 %v3674_v63 }
  0xfd   :  { %3415 = vmatpush3.bf16.msra.mxu1 %v3675_v0  ;;  %3394 = vmatprep.subr.bf16.mxu0 %v3676_v2 }
  0xfe   :  { %3416 = vmatprep.subr.bf16.mxu1 %v3677_v4 }
 0x100   :  { %3395 = vmatpush3.bf16.msra.mxu0 %v3678_v6 }
 0x101   :  { %3417 = vmatpush3.bf16.msra.mxu1 %v3679_v9 }
 0x103   :  { %v3132_v1 = vpop.f32.mrf.mxu0  ;;  %2735 = vmatmul.mubr.bf16.vlgmr.msra.gmra.mxu0 %v83_v20 }
 0x104   :  { %v3154_v3 = vpop.f32.mrf.mxu1  ;;  %2775 = vmatmul.mubr.bf16.vlgmr.msra.gmra.mxu1 %v85_v21 }
 0x105   :  { %v3133_v5 = vpop.f32.mrf.mxu0 }
 0x106   :  { %v3134_v7 = vadd.f32 %v3133_v5, %v3132_v1  ;;  %v3155_v8 = vpop.f32.mrf.mxu1 }
 0x107   :  { %v3156_v11 = vadd.f32 %v3155_v8, %v3154_v3  ;;  %v3135_v12 = vpop.f32.mrf.mxu0 }
 0x108   :  { %v2257_v17 = vadd.f32 %v3134_v7, %v4491_v42  ;;  %v3157_v18 = vpop.f32.mrf.mxu1 }
 0x109   :  { %v3136_v22 = vpop.f32.mrf.mxu0 }
 0x10a   :  { %v2297_v23 = vadd.f32 %v3156_v11, %v2257_v17  ;;  %v3158_v24 = vpop.f32.mrf.mxu1 }
 0x123   :  { %v3176_v25 = vpop.f32.mrf.mxu0 }
 0x124   :  { %v3198_v26 = vpop.f32.mrf.mxu1 }
 0x125   :  { %v3177_v27 = vpop.f32.mrf.mxu0 }
 0x126   :  { %v3178_v28 = vadd.f32 %v3177_v27, %v3176_v25  ;;  %v3199_v29 = vpop.f32.mrf.mxu1 }
 0x127   :  { %v3200_v30 = vadd.f32 %v3199_v29, %v3198_v26  ;;  %v3179_v31 = vpop.f32.mrf.mxu0 }
 0x128   :  { %v2337_v32 = vadd.f32 %v3178_v28, %v2297_v23  ;;  %v3201_v33 = vpop.f32.mrf.mxu1 }
 0x129   :  { %v3180_v34 = vpop.f32.mrf.mxu0 }
 0x12a   :  { %v2377_v35 = vadd.f32 %v3200_v30, %v2337_v32  ;;  %v3202_v36 = vpop.f32.mrf.mxu1  ;;  %v3070_v34 = vld [vmem:[%s4597_s3] ss:$0 sm:$0xff] }
 0x143   :  { %v3220_v37 = vpop.f32.mrf.mxu0 }
 0x144   :  { %v3242_v38 = vpop.f32.mrf.mxu1 }
 0x145   :  { %v3221_v39 = vpop.f32.mrf.mxu0 }
 0x146   :  { %v3243_v40 = vpop.f32.mrf.mxu1  ;;  %v3222_v41 = vadd.f32 %v3221_v39, %v3220_v37  ;;  %v3071_v37 = vld [vmem:[#allocation2] ss:$0 sm:$0xff] }
 0x147   :  { %v3244_v42 = vadd.f32 %v3243_v40, %v3242_v38  ;;  %v3223_v43 = vpop.f32.mrf.mxu0 }
 0x148   :  { %v3245_v44 = vpop.f32.mrf.mxu1  ;;  %v2417_v45 = vadd.f32 %v3222_v41, %v2377_v35 }
 0x149   :  { %v3224_v46 = vpop.f32.mrf.mxu0 }
 0x14a   :  { %v3246_v47 = vpop.f32.mrf.mxu1  ;;  %v2457_v48 = vadd.f32 %v3244_v42, %v2417_v45 }
 0x163   :  { %v3264_v50 = vpop.f32.mrf.mxu0 }
 0x164   :  { %v3286_v51 = vpop.f32.mrf.mxu1 }
 0x165   :  { %v3265_v52 = vpop.f32.mrf.mxu0 }
 0x166   :  { %v3266_v53 = vadd.f32 %v3265_v52, %v3264_v50  ;;  %v3287_v54 = vpop.f32.mrf.mxu1 }
 0x167   :  { %v3288_v55 = vadd.f32 %v3287_v54, %v3286_v51  ;;  %v3267_v56 = vpop.f32.mrf.mxu0 }
 0x168   :  { %v2497_v57 = vadd.f32 %v3266_v53, %v2457_v48  ;;  %v3289_v58 = vpop.f32.mrf.mxu1 }
 0x169   :  { %v3268_v59 = vpop.f32.mrf.mxu0 }
 0x16a   :  { %v2537_v60 = vadd.f32 %v3288_v55, %v2497_v57  ;;  %v3290_v61 = vpop.f32.mrf.mxu1 }
 0x183   :  { %v3308_v62 = vpop.f32.mrf.mxu0 }
 0x184   :  { %v3330_v63 = vpop.f32.mrf.mxu1 }
 0x185   :  { %v3309_v0 = vpop.f32.mrf.mxu0 }
 0x186   :  { %v3331_v1 = vpop.f32.mrf.mxu1  ;;  %v3310_v14 = vadd.f32 %v3309_v0, %v3308_v62 }
 0x187   :  { %v3311_v2 = vpop.f32.mrf.mxu0  ;;  %v3332_v16 = vadd.f32 %v3331_v1, %v3330_v63 }
 0x188   :  { %v3333_v3 = vpop.f32.mrf.mxu1  ;;  %v2577_v15 = vadd.f32 %v3310_v14, %v2537_v60 }
 0x189   :  { %v3312_v4 = vpop.f32.mrf.mxu0 }
 0x18a   :  { %v3334_v5 = vpop.f32.mrf.mxu1  ;;  %v2617_v18 = vadd.f32 %v3332_v16, %v2577_v15 }
 0x1a3   :  { %v3352_v6 = vpop.f32.mrf.mxu0 }
 0x1a4   :  { %v3374_v7 = vpop.f32.mrf.mxu1 }
 0x1a5   :  { %v3353_v8 = vpop.f32.mrf.mxu0 }
 0x1a6   :  { %v3375_v9 = vpop.f32.mrf.mxu1  ;;  %v3354_v17 = vadd.f32 %v3353_v8, %v3352_v6 }
 0x1a7   :  { %v3355_v10 = vpop.f32.mrf.mxu0  ;;  %v3376_v20 = vadd.f32 %v3375_v9, %v3374_v7 }
 0x1a8   :  { %v3377_v11 = vpop.f32.mrf.mxu1  ;;  %v2657_v19 = vadd.f32 %v3354_v17, %v2617_v18 }
 0x1a9   :  { %v3356_v12 = vpop.f32.mrf.mxu0 }
 0x1aa   :  { %v3378_v13 = vpop.f32.mrf.mxu1  ;;  %v2697_v24 = vadd.f32 %v3376_v20, %v2657_v19 }
 0x1c3   :  { %v3396_v21 = vpop.f32.mrf.mxu0 }
 0x1c4   :  { %v3418_v22 = vpop.f32.mrf.mxu1 }
 0x1c5   :  { %v3397_v23 = vpop.f32.mrf.mxu0 }
 0x1c6   :  { %v3398_v25 = vadd.f32 %v3397_v23, %v3396_v21  ;;  %v3419_v26 = vpop.f32.mrf.mxu1 }
 0x1c7   :  { %v3399_v27 = vpop.f32.mrf.mxu0  ;;  %v3420_v29 = vadd.f32 %v3419_v26, %v3418_v22 }
 0x1c8   :  { %v2737_v28 = vadd.f32 %v3398_v25, %v2697_v24  ;;  %v3421_v30 = vpop.f32.mrf.mxu1 }
 0x1c9   :  { %v3400_v31 = vpop.f32.mrf.mxu0 }
 0x1ca   :  { %v3422_v32 = vpop.f32.mrf.mxu1  ;;  %v2777_v33 = vadd.f32 %v3420_v29, %v2737_v28 }
 0x1cc   :  { %v2782_v35 = vmax.f32 %v2777_v33, 0.0 }
 0x1ce   :  { %v2790_v36 = vmul.f32 %v3070_v34, %v2782_v35 }
 0x1d0   :  { %2791 = vadd.xlane.f32.xlu0 %v2790_v36 }
 0x259   :  { %v2792_v38 = vpop.xlane.xlu0 %2791 }
 0x25a   :  { %v2800_v39 = vadd.f32 %v3071_v37, %v2792_v38 }
 0x25c   :  { %v2801_v40 = vsub.f32 0.0, %v2800_v39 }
 0x25e   :  { %v2802_v41 = vmul.f32 1.442695, %v2801_v40 }
 0x260   :  { %3680 = vpow2.f32 %v2802_v41 }
 0x26d   :  { %v3681_v42 = vpop.eup %3680 }
 0x26e   :  { %v2804_v43 = vadd.f32 1.0, %v3681_v42 }
 0x270   :  { %3682 = vrcp.f32 %v2804_v43 }
 0x27d   :  { %v3683_v44 = vpop.eup %3682 }
 0x27e   :  { %2808 = vst.msk [vmem:[%s4598_s5] sm:$0xff] %vm2807_vm0, %v3683_v44 }

</bundles_post_ra>
